<compile_context>
chip_gen: v7x
topology: tpu7x:2x2x1
jax: 0.10.0
libtpu: 0.0.40
codegen_flags: <defaults>
</compile_context>

<pallas_src>
import functools

import jax
import jax.numpy as jnp
from jax.experimental import pallas as pl
from jax.experimental.pallas import tpu as pltpu

_LANE = 128
_PAD_NEG = -1e30   # padded-class bias -> exp underflows to exactly 0 in softmax


def _round_up(n, m):
    return ((n + m - 1) // m) * m


def _pick_tb(batch, in_f, center_p, classes_p, x_bytes, w_bytes):
    """Batch-tile rows: biggest tile that fits an honest VMEM budget."""
    # VMEM-resident weights/biases (single-buffered) count against the budget.
    resident = ((in_f * center_p + center_p * classes_p) * w_bytes
                + (center_p + classes_p) * 8 * 4)            # biases pad to 8 sublanes
    # Streamed / per-row footprint: x tile (2 buffers), output tile (2 buffers,
    # lane-padded in VMEM) and in-kernel intermediates (h, logits, exp, probs).
    per_row = (in_f * x_bytes * 2
               + _LANE * 4 * 2
               + (center_p + 4 * classes_p) * 4)
    budget = 12 * 1024 * 1024    # conservative on v5e (16 MiB scoped default);
                                 # explicit vmem_limit_bytes adds headroom.
    avail = max(budget - resident, 2 * 1024 * 1024)
    tb = max(8, min(1024, avail // max(per_row, 1)))
    tb = max(8, (tb // 8) * 8)                                # sublane multiple
    return min(tb, _round_up(batch, 8))                       # don't exceed batch


def _vmem_limit_bytes(tb, in_f, center_p, classes_p, x_bytes, w_bytes):
    """Upper-bound footprint (weights counted double-buffered) + headroom."""
    resident = ((in_f * center_p + center_p * classes_p) * w_bytes
                + (center_p + classes_p) * 8 * 4) * 2
    streamed = tb * in_f * x_bytes * 2 + tb * _LANE * 4 * 2
    scratch = tb * (center_p + 4 * classes_p) * 4
    need = resident + streamed + scratch
    return int(min(max(2 * need + (8 << 20), 16 << 20), 40 << 20))


# ----------------------------- kernels ------------------------------------ #

def _probs_tile(x_ref, w1_ref, b1_ref, w2_ref, b2_ref):
    # layer1 (MXU, f32 accumulate); the in-kernel cast is a cheap VPU op
    # (no-op in f32 mode) hidden under DMA/MXU — x is never pre-cast in HBM.
    h = jnp.dot(x_ref[...].astype(w1_ref.dtype), w1_ref[...],
                preferred_element_type=jnp.float32) + b1_ref[...]
    h = jax.nn.sigmoid(h)                       # EUP logistic path, f32
    logits = jnp.dot(h.astype(w2_ref.dtype), w2_ref[...],
                     preferred_element_type=jnp.float32) + b2_ref[...]
    # softmax over the lane-padded class axis; padded columns carry a -1e30
    # bias so their exp terms are exactly 0 and the denominator is exact.
    m = jnp.max(logits, axis=-1, keepdims=True)
    e = jnp.exp(logits - m)
    denom = jnp.sum(e, axis=-1, keepdims=True)
    return e / denom                            # exact divide: probs are consumed


def _softmax_kernel(x_ref, w1_ref, b1_ref, w2_ref, b2_ref, o_ref, *, class_size):
    probs = _probs_tile(x_ref, w1_ref, b1_ref, w2_ref, b2_ref)
    # Store only the real classes: masked vst when class_size < 128, but no
    # write amplification and no post-kernel slice.
    o_ref[...] = probs[:, :class_size].astype(o_ref.dtype)


def _xent_kernel(x_ref, w1_ref, b1_ref, w2_ref, b2_ref, y_ref, loss_ref, *,
                 class_size):
    probs = _probs_tile(x_ref, w1_ref, b1_ref, w2_ref, b2_ref)
    lane = jax.lax.broadcasted_iota(jnp.int32, probs.shape, 1)
    valid = lane < class_size
    # PyTorch quirk reproduced exactly: cross_entropy re-applies log_softmax
    # to the *probabilities*; logsumexp runs over the real classes only.
    z = jnp.where(valid, probs, _PAD_NEG)
    m = jnp.max(z, axis=-1, keepdims=True)
    lse = m + jnp.log(jnp.sum(jnp.exp(z - m), axis=-1, keepdims=True))
    onehot = (lane == y_ref[...]).astype(jnp.float32)
    p_label = jnp.sum(probs * onehot, axis=-1, keepdims=True)
    loss_ref[...] = lse - p_label               # per-row -log_softmax(probs)[y]


# ----------------------------- wrapper ------------------------------------ #

def _forward_call(x, w1, b1, w2, b2, labels=None, *, block_batch=None,
                  use_bf16=None):
    batch, in_f = x.shape
    center = w1.shape[1]
    class_size = w2.shape[1]
    center_p = _round_up(center, _LANE)
    classes_p = _round_up(class_size, _LANE)

    if use_bf16 is None:
        # bf16 MXU operands (f32 accumulate) whenever the weights are
        # non-trivial; elementwise math stays f32 on every generation.
        use_bf16 = center >= _LANE

    # --- one-time weight padding (cheap, amortized over the batch grid) ----
    if center_p != center:          # lane-dense hidden axis
        w1 = jnp.pad(w1, ((0, 0), (0, center_p - center)))
        b1 = jnp.pad(b1, ((0, 0), (0, center_p - center)))
        w2 = jnp.pad(w2, ((0, center_p - center), (0, 0)))
    if classes_p != class_size:     # lane-dense class axis for the reductions
        w2 = jnp.pad(w2, ((0, 0), (0, classes_p - class_size)))
        b2 = jnp.pad(b2, ((0, 0), (0, classes_p - class_size)),
                     constant_values=_PAD_NEG)

    w_bytes = 2 if use_bf16 else 4
    if use_bf16:                    # one-time weight cast; x left untouched in HBM
        w1 = w1.astype(jnp.bfloat16)
        w2 = w2.astype(jnp.bfloat16)

    x_bytes = x.dtype.itemsize
    tb = block_batch or _pick_tb(batch, in_f, center_p, classes_p,
                                 x_bytes, w_bytes)
    grid = (pl.cdiv(batch, tb),)    # partial last block: OOB stores are masked

    compiler_params = pltpu.CompilerParams(
        dimension_semantics=("parallel",),
        vmem_limit_bytes=_vmem_limit_bytes(tb, in_f, center_p, classes_p,
                                           x_bytes, w_bytes))

    if labels is None:
        kernel = functools.partial(_softmax_kernel, class_size=class_size)
        out_shape = jax.ShapeDtypeStruct((batch, class_size), jnp.float32)
        out_spec = pl.BlockSpec((tb, class_size), lambda i: (i, 0))
        extra_args, extra_specs = (), ()
    else:
        kernel = functools.partial(_xent_kernel, class_size=class_size)
        out_shape = jax.ShapeDtypeStruct((batch, 1), jnp.float32)
        out_spec = pl.BlockSpec((tb, 1), lambda i: (i, 0))
        y2d = labels.reshape(batch, 1).astype(jnp.int32)
        extra_args = (y2d,)
        extra_specs = (pl.BlockSpec((tb, 1), lambda i: (i, 0)),)

    def resident_spec(shape, single_buffer):
        if single_buffer and hasattr(pl, "Buffered"):
            try:
                # constant index_map -> fetched once; single buffer halves the
                # resident VMEM (matters most under v7x's 64 MiB physical).
                return pl.BlockSpec(shape, lambda i: (0, 0),
                                    pipeline_mode=pl.Buffered(1))
            except TypeError:
                pass
        return pl.BlockSpec(shape, lambda i: (0, 0))

    def call(single_buffer_weights):
        in_specs = [pl.BlockSpec((tb, in_f), lambda i: (i, 0)),   # streamed x
                    resident_spec(w1.shape, single_buffer_weights),
                    resident_spec(b1.shape, single_buffer_weights),
                    resident_spec(w2.shape, single_buffer_weights),
                    resident_spec(b2.shape, single_buffer_weights),
                    *extra_specs]
        return pl.pallas_call(
            kernel,
            out_shape=out_shape,
            grid=grid,
            in_specs=in_specs,
            out_specs=out_spec,
            compiler_params=compiler_params,
        )(x, w1, b1, w2, b2, *extra_args)

    try:
        return call(True)
    except Exception:
        # pl.Buffered(1) not supported on this jax/libtpu -> fall back to the
        # default double-buffered weights (identical results).
        return call(False)


def mlp_softmax(x, w1, b1, w2, b2, **kw):
    """softmax(sigmoid(x @ W1 + b1) @ W2 + b2, axis=1) -> (batch, class_size)."""
    return _forward_call(x, w1, b1, w2, b2, labels=None, **kw)


def mlp_softmax_xent(x, w1, b1, w2, b2, y, **kw):
    """F.cross_entropy(softmax probs, y), mean reduction (PyTorch quirk kept)."""
    per_row = _forward_call(x, w1, b1, w2, b2, labels=y, **kw)   # (batch, 1)
    return jnp.mean(per_row)                                     # tiny JAX glue


def torch_module_forward(x, params, y=None):
    """Mirrors TorchModule.forward: probs when y is None, CE loss otherwise."""
    w1, b1, w2, b2 = params
    if y is None:
        return mlp_softmax(x, w1, b1, w2, b2)
    return mlp_softmax_xent(x, w1, b1, w2, b2, y)


# ----------------------------- reference / demo ---------------------------- #

def init_params(key, input_size, center_size, class_size):
    """Deterministic nn.Linear-style init (uniform +/- 1/sqrt(fan_in))."""
    k1, k2, k3, k4 = jax.random.split(key, 4)
    lim1 = 1.0 / jnp.sqrt(jnp.float32(input_size))
    lim2 = 1.0 / jnp.sqrt(jnp.float32(center_size))
    w1 = jax.random.uniform(k1, (input_size, center_size), jnp.float32, -lim1, lim1)
    b1 = jax.random.uniform(k2, (1, center_size), jnp.float32, -lim1, lim1)
    w2 = jax.random.uniform(k3, (center_size, class_size), jnp.float32, -lim2, lim2)
    b2 = jax.random.uniform(k4, (1, class_size), jnp.float32, -lim2, lim2)
    return w1, b1, w2, b2


def _ref_forward(x, params):
    w1, b1, w2, b2 = params
    h = jax.nn.sigmoid(x @ w1 + b1)
    return jax.nn.softmax(h @ w2 + b2, axis=1)


def _ref_loss(x, params, y):
    probs = _ref_forward(x, params)
    log_probs = jax.nn.log_softmax(probs, axis=1)   # PyTorch CE on probabilities
    return -jnp.mean(jnp.take_along_axis(log_probs, y[:, None], axis=1))


if __name__ == "__main__":
    key = jax.random.PRNGKey(0)
    # batch=10 exercises the masked partial batch block; class_size=4 exercises
    # the 128-lane class padding and the unpadded masked output store.
    batch, input_size, center_size, class_size = 10, 16, 24, 4

    kx, ky, kp = jax.random.split(key, 3)
    x = jax.random.normal(kx, (batch, input_size), jnp.float32)
    y = jax.random.randint(ky, (batch,), 0, class_size, jnp.int32)
    params = init_params(kp, input_size, center_size, class_size)

    # prediction path (y=None)
    probs = jax.block_until_ready(torch_module_forward(x, params))
    assert probs.shape == (batch, class_size)
    assert bool(jnp.allclose(jnp.sum(probs, axis=1), 1.0, atol=1e-4))
    assert bool(jnp.allclose(probs, _ref_forward(x, params), atol=2e-3))

    # loss path (y provided) — fused in-kernel cross-entropy
    loss = jax.block_until_ready(torch_module_forward(x, params, y))
    assert loss.shape == ()
    assert bool(jnp.allclose(loss, _ref_loss(x, params, y), atol=2e-3))

    print("KERNEL_OK")
</pallas_src>

<mosaic_0001>
module attributes {stable_mosaic.version = 11 : i64} {
  func.func @_softmax_kernel(%arg0: i32, %arg1: memref<16x16xf32, #tpu.memory_space<vmem>>, %arg2: memref<16x128xf32, #tpu.memory_space<vmem>>, %arg3: memref<1x128xf32, #tpu.memory_space<vmem>>, %arg4: memref<128x128xf32, #tpu.memory_space<vmem>>, %arg5: memref<1x128xf32, #tpu.memory_space<vmem>>, %arg6: memref<16x4xf32, #tpu.memory_space<vmem>>) attributes {dimension_semantics = [#tpu.dimension_semantics<parallel>], iteration_bounds = array<i64: 1>, scalar_prefetch = 0 : i64, scratch_operands = 0 : i64, tpu.core_type = #tpu.core_type<tc>, window_params = [{transform_indices = @transform_0, window_bounds = array<i64: 16, 16>}, {pipeline_mode = #tpu.pipeline_mode<synchronous>, transform_indices = @transform_1, window_bounds = array<i64: 16, 128>}, {pipeline_mode = #tpu.pipeline_mode<synchronous>, transform_indices = @transform_2, window_bounds = array<i64: 1, 128>}, {pipeline_mode = #tpu.pipeline_mode<synchronous>, transform_indices = @transform_3, window_bounds = array<i64: 128, 128>}, {pipeline_mode = #tpu.pipeline_mode<synchronous>, transform_indices = @transform_4, window_bounds = array<i64: 1, 128>}, {transform_indices = @transform_5, window_bounds = array<i64: 16, 4>}]} {
    %c0 = arith.constant 0 : index
    %c0_0 = arith.constant 0 : index
    %0 = vector.load %arg1[%c0, %c0_0] : memref<16x16xf32, #tpu.memory_space<vmem>>, vector<16x16xf32>
    %c0_1 = arith.constant 0 : index
    %c0_2 = arith.constant 0 : index
    %1 = vector.load %arg2[%c0_1, %c0_2] : memref<16x128xf32, #tpu.memory_space<vmem>>, vector<16x128xf32>
    %cst = arith.constant dense<0.000000e+00> : vector<16x128xf32>
    %2 = tpu.matmul %0, %1, %cst {dimension_numbers = #tpu.dot_dimension_numbers<[1], [0], [0], [1], [0, 0, 1, 1], [], []>} : vector<16x16xf32>, vector<16x128xf32>, vector<16x128xf32> -> vector<16x128xf32>
    %c0_3 = arith.constant 0 : index
    %c0_4 = arith.constant 0 : index
    %3 = vector.load %arg3[%c0_3, %c0_4] : memref<1x128xf32, #tpu.memory_space<vmem>>, vector<1x128xf32>
    %4 = vector.broadcast %3 : vector<1x128xf32> to vector<16x128xf32>
    %5 = arith.addf %2, %4 : vector<16x128xf32>
    %6 = arith.negf %5 : vector<16x128xf32>
    %7 = math.exp %6 : vector<16x128xf32>
    %cst_5 = arith.constant 1.000000e+00 : f32
    %8 = vector.broadcast %cst_5 : f32 to vector<16x128xf32>
    %9 = arith.addf %8, %7 : vector<16x128xf32>
    %10 = arith.divf %8, %9 : vector<16x128xf32>
    %c0_6 = arith.constant 0 : index
    %c0_7 = arith.constant 0 : index
    %11 = vector.load %arg4[%c0_6, %c0_7] : memref<128x128xf32, #tpu.memory_space<vmem>>, vector<128x128xf32>
    %cst_8 = arith.constant dense<0.000000e+00> : vector<16x128xf32>
    %12 = tpu.matmul %10, %11, %cst_8 {dimension_numbers = #tpu.dot_dimension_numbers<[1], [0], [0], [1], [0, 0, 1, 1], [], []>} : vector<16x128xf32>, vector<128x128xf32>, vector<16x128xf32> -> vector<16x128xf32>
    %c0_9 = arith.constant 0 : index
    %c0_10 = arith.constant 0 : index
    %13 = vector.load %arg5[%c0_9, %c0_10] : memref<1x128xf32, #tpu.memory_space<vmem>>, vector<1x128xf32>
    %14 = vector.broadcast %13 : vector<1x128xf32> to vector<16x128xf32>
    %15 = arith.addf %12, %14 : vector<16x128xf32>
    %cst_11 = arith.constant dense<0xFF800000> : vector<16xf32>
    %16 = vector.multi_reduction <maximumf>, %15, %cst_11 [1] : vector<16x128xf32> to vector<16xf32>
    %17 = vector.shape_cast %16 : vector<16xf32> to vector<16x1xf32>
    %18 = vector.broadcast %17 : vector<16x1xf32> to vector<16x128xf32>
    %19 = arith.subf %15, %18 : vector<16x128xf32>
    %20 = math.exp %19 : vector<16x128xf32>
    %cst_12 = arith.constant dense<0.000000e+00> : vector<16xf32>
    %21 = vector.multi_reduction <add>, %20, %cst_12 [1] : vector<16x128xf32> to vector<16xf32>
    %22 = vector.shape_cast %21 : vector<16xf32> to vector<16x1xf32>
    %23 = vector.broadcast %22 : vector<16x1xf32> to vector<16x128xf32>
    %24 = arith.divf %20, %23 : vector<16x128xf32>
    %25 = vector.extract_strided_slice %24 {offsets = [0, 0], sizes = [16, 4], strides = [1, 1]} : vector<16x128xf32> to vector<16x4xf32>
    %c0_13 = arith.constant 0 : index
    %c0_14 = arith.constant 0 : index
    %26 = vector.load %arg6[%c0_13, %c0_14] : memref<16x4xf32, #tpu.memory_space<vmem>>, vector<16x4xf32>
    tpu.vector_store %arg6[%c0_13, %c0_14], %25 {strides = array<i32>} : memref<16x4xf32, #tpu.memory_space<vmem>>, vector<16x4xf32>,
    return
  }
  func.func @transform_0(%arg0: i32) -> (i32, i32) {
    %c0_i32 = arith.constant 0 : i32
    %c0_i32_0 = arith.constant 0 : i32
    return %arg0, %c0_i32 : i32, i32
  }
  func.func @transform_1(%arg0: i32) -> (i32, i32) {
    %c0_i32 = arith.constant 0 : i32
    %c0_i32_0 = arith.constant 0 : i32
    %c0_i32_1 = arith.constant 0 : i32
    return %c0_i32, %c0_i32_0 : i32, i32
  }
  func.func @transform_2(%arg0: i32) -> (i32, i32) {
    %c0_i32 = arith.constant 0 : i32
    %c0_i32_0 = arith.constant 0 : i32
    %c0_i32_1 = arith.constant 0 : i32
    return %c0_i32, %c0_i32_0 : i32, i32
  }
  func.func @transform_3(%arg0: i32) -> (i32, i32) {
    %c0_i32 = arith.constant 0 : i32
    %c0_i32_0 = arith.constant 0 : i32
    %c0_i32_1 = arith.constant 0 : i32
    return %c0_i32, %c0_i32_0 : i32, i32
  }
  func.func @transform_4(%arg0: i32) -> (i32, i32) {
    %c0_i32 = arith.constant 0 : i32
    %c0_i32_0 = arith.constant 0 : i32
    %c0_i32_1 = arith.constant 0 : i32
    return %c0_i32, %c0_i32_0 : i32, i32
  }
  func.func @transform_5(%arg0: i32) -> (i32, i32) {
    %c0_i32 = arith.constant 0 : i32
    %c0_i32_0 = arith.constant 0 : i32
    return %arg0, %c0_i32 : i32, i32
  }
}

module attributes {stable_mosaic.version = 11 : i64} {
  func.func @_softmax_kernel(%arg0: i32, %arg1: memref<16x16xf32, #tpu.memory_space<vmem>>, %arg2: memref<16x128xf32, #tpu.memory_space<vmem>>, %arg3: memref<1x128xf32, #tpu.memory_space<vmem>>, %arg4: memref<128x128xf32, #tpu.memory_space<vmem>>, %arg5: memref<1x128xf32, #tpu.memory_space<vmem>>, %arg6: memref<16x4xf32, #tpu.memory_space<vmem>>) attributes {dimension_semantics = [#tpu.dimension_semantics<parallel>], iteration_bounds = array<i64: 1>, scalar_prefetch = 0 : i64, scratch_operands = 0 : i64, tpu.core_type = #tpu.core_type<tc>, window_params = [{transform_indices = @transform_0, window_bounds = array<i64: 16, 16>}, {pipeline_mode = #tpu.pipeline_mode<synchronous>, transform_indices = @transform_1, window_bounds = array<i64: 16, 128>}, {pipeline_mode = #tpu.pipeline_mode<synchronous>, transform_indices = @transform_2, window_bounds = array<i64: 1, 128>}, {pipeline_mode = #tpu.pipeline_mode<synchronous>, transform_indices = @transform_3, window_bounds = array<i64: 128, 128>}, {pipeline_mode = #tpu.pipeline_mode<synchronous>, transform_indices = @transform_4, window_bounds = array<i64: 1, 128>}, {transform_indices = @transform_5, window_bounds = array<i64: 16, 4>}]} {
    %c0 = arith.constant 0 : index
    %c0_0 = arith.constant 0 : index
    %0 = vector.load %arg1[%c0, %c0_0] : memref<16x16xf32, #tpu.memory_space<vmem>>, vector<16x16xf32>
    %c0_1 = arith.constant 0 : index
    %c0_2 = arith.constant 0 : index
    %1 = vector.load %arg2[%c0_1, %c0_2] : memref<16x128xf32, #tpu.memory_space<vmem>>, vector<16x128xf32>
    %cst = arith.constant dense<0.000000e+00> : vector<16x128xf32>
    %2 = tpu.matmul %0, %1, %cst {dimension_numbers = #tpu.dot_dimension_numbers<[1], [0], [0], [1], [0, 0, 1, 1], [], []>} : vector<16x16xf32>, vector<16x128xf32>, vector<16x128xf32> -> vector<16x128xf32>
    %c0_3 = arith.constant 0 : index
    %c0_4 = arith.constant 0 : index
    %3 = vector.load %arg3[%c0_3, %c0_4] : memref<1x128xf32, #tpu.memory_space<vmem>>, vector<1x128xf32>
    %4 = vector.broadcast %3 : vector<1x128xf32> to vector<16x128xf32>
    %5 = arith.addf %2, %4 : vector<16x128xf32>
    %6 = arith.negf %5 : vector<16x128xf32>
    %7 = math.exp %6 : vector<16x128xf32>
    %cst_5 = arith.constant 1.000000e+00 : f32
    %8 = vector.broadcast %cst_5 : f32 to vector<16x128xf32>
    %9 = arith.addf %8, %7 : vector<16x128xf32>
    %10 = arith.divf %8, %9 : vector<16x128xf32>
    %c0_6 = arith.constant 0 : index
    %c0_7 = arith.constant 0 : index
    %11 = vector.load %arg4[%c0_6, %c0_7] : memref<128x128xf32, #tpu.memory_space<vmem>>, vector<128x128xf32>
    %cst_8 = arith.constant dense<0.000000e+00> : vector<16x128xf32>
    %12 = tpu.matmul %10, %11, %cst_8 {dimension_numbers = #tpu.dot_dimension_numbers<[1], [0], [0], [1], [0, 0, 1, 1], [], []>} : vector<16x128xf32>, vector<128x128xf32>, vector<16x128xf32> -> vector<16x128xf32>
    %c0_9 = arith.constant 0 : index
    %c0_10 = arith.constant 0 : index
    %13 = vector.load %arg5[%c0_9, %c0_10] : memref<1x128xf32, #tpu.memory_space<vmem>>, vector<1x128xf32>
    %14 = vector.broadcast %13 : vector<1x128xf32> to vector<16x128xf32>
    %15 = arith.addf %12, %14 : vector<16x128xf32>
    %cst_11 = arith.constant dense<0xFF800000> : vector<16xf32>
    %16 = vector.multi_reduction <maximumf>, %15, %cst_11 [1] : vector<16x128xf32> to vector<16xf32>
    %17 = vector.shape_cast %16 : vector<16xf32> to vector<16x1xf32>
    %18 = vector.broadcast %17 : vector<16x1xf32> to vector<16x128xf32>
    %19 = arith.subf %15, %18 : vector<16x128xf32>
    %20 = math.exp %19 : vector<16x128xf32>
    %cst_12 = arith.constant dense<0.000000e+00> : vector<16xf32>
    %21 = vector.multi_reduction <add>, %20, %cst_12 [1] : vector<16x128xf32> to vector<16xf32>
    %22 = vector.shape_cast %21 : vector<16xf32> to vector<16x1xf32>
    %23 = vector.broadcast %22 : vector<16x1xf32> to vector<16x128xf32>
    %24 = arith.divf %20, %23 : vector<16x128xf32>
    %25 = vector.extract_strided_slice %24 {offsets = [0, 0], sizes = [16, 4], strides = [1, 1]} : vector<16x128xf32> to vector<16x4xf32>
    %c0_13 = arith.constant 0 : index
    %c0_14 = arith.constant 0 : index
    %26 = vector.load %arg6[%c0_13, %c0_14] : memref<16x4xf32, #tpu.memory_space<vmem>>, vector<16x4xf32>
    tpu.vector_store %arg6[%c0_13, %c0_14], %25 {strides = array<i32>} : memref<16x4xf32, #tpu.memory_space<vmem>>, vector<16x4xf32>,
    return
  }
  func.func @transform_0(%arg0: i32) -> (i32, i32) {
    %c0_i32 = arith.constant 0 : i32
    %c0_i32_0 = arith.constant 0 : i32
    return %arg0, %c0_i32 : i32, i32
  }
  func.func @transform_1(%arg0: i32) -> (i32, i32) {
    %c0_i32 = arith.constant 0 : i32
    %c0_i32_0 = arith.constant 0 : i32
    %c0_i32_1 = arith.constant 0 : i32
    return %c0_i32, %c0_i32_0 : i32, i32
  }
  func.func @transform_2(%arg0: i32) -> (i32, i32) {
    %c0_i32 = arith.constant 0 : i32
    %c0_i32_0 = arith.constant 0 : i32
    %c0_i32_1 = arith.constant 0 : i32
    return %c0_i32, %c0_i32_0 : i32, i32
  }
  func.func @transform_3(%arg0: i32) -> (i32, i32) {
    %c0_i32 = arith.constant 0 : i32
    %c0_i32_0 = arith.constant 0 : i32
    %c0_i32_1 = arith.constant 0 : i32
    return %c0_i32, %c0_i32_0 : i32, i32
  }
  func.func @transform_4(%arg0: i32) -> (i32, i32) {
    %c0_i32 = arith.constant 0 : i32
    %c0_i32_0 = arith.constant 0 : i32
    %c0_i32_1 = arith.constant 0 : i32
    return %c0_i32, %c0_i32_0 : i32, i32
  }
  func.func @transform_5(%arg0: i32) -> (i32, i32) {
    %c0_i32 = arith.constant 0 : i32
    %c0_i32_0 = arith.constant 0 : i32
    return %arg0, %c0_i32 : i32, i32
  }
}

</mosaic_0001>

<bundles_post_ra>
// kernel: tpu_custom_call.1
= control target key start
LH: loop header
LB: loop body
LE: loop exit
PB: predicated region body
PF: predicated region fallthrough
CT: control target
= control target key end

     0   :  { %10 = vsyncpa [#allocation3], 0  ;;  %s587_s0 = inlined_call_operand.hbm [shape: f32[10,16], index: 0, kind: input, shape index: {}]   ;;  %s588_s1 = inlined_call_operand.hbm [shape: f32[16,128], index: 1, kind: input, shape index: {}]   ;;  %s589_s2 = inlined_call_operand.vmem [shape: f32[1,128], index: 2, kind: input, shape index: {}]   ;;  %s590_s3 = inlined_call_operand.hbm [shape: f32[128,128], index: 3, kind: input, shape index: {}]   ;;  %s591_s4 = inlined_call_operand.vmem [shape: f32[1,128], index: 4, kind: input, shape index: {}]   ;;  %s592_s5 = inlined_call_operand.vmem [shape: f32[10,4], index: 5, kind: output, shape index: {}]  }
   0x1   :  { %11 = vsyncpa [#allocation5], 0  ;;  %s488_s18 = smov [#allocation4]   ;;  %s489_s20 = smov [#allocation2]  }
   0x2   :  { %s29_s19 = sshll.u32 %s488_s18, 4  ;;  %s17_s21 = sshll.u32 %s489_s20, 4  ;;  %s30_s19 = int_to_ptr.vmem [resolvable:$true] %s29_s19  ;;  %s523_s21 = int_to_ptr.vmem [resolvable:$true] %s17_s21 }
   0x3   :  { %s418_s24 = scalar_lea.hbm %s588_s1, 256 }
   0x4   :  { %p419_p0 = scmp.ne.s32.totalorder %s588_s1, %s418_s24  ;;  %p422_p1 = scmp.lt.u32.totalorder %s418_s24, %s588_s1 }
   0x6   :  { %p424_p2 = pnand %p422_p1, %p419_p0 }
   0x8   :  { %427 = shalt.err (!%p424_p2)
}
   0x9   :  { %s428_s29 = scalar_lea.vmem %s30_s19, 256  ;;  %p433_p4 = scmp.lt.s32.totalorder %s30_s19, %s30_s19 }
   0xa   :  { %p429_p3 = scmp.ne.s32.totalorder %s30_s19, %s428_s29  ;;  %p434_p5 = scmp.lt.s32.totalorder %s428_s29, %s428_s29 }
   0xc   :  { %p435_p6 = por %p434_p5, %p433_p4 }
   0xe   :  { %p436_p7 = pnand %p435_p6, %p429_p3 }
  0x10   :  { %439 = shalt.err (!%p436_p7)
}
  0x11   :  { %s490_s30 = smov 128   ;;  %s491_s6 = smov 8  }
  0x12   :  { %35 = dma.hbm_to_vmem [thread:$0]  %s588_s1, 256, %s30_s19, [#allocation5], %s490_s30, %s490_s30, %s491_s6  }
  0x13   :  { %s440_s11 = scalar_lea.hbm %s587_s0, 256 }
  0x14   :  { %p441_p8 = scmp.ne.s32.totalorder %s587_s0, %s440_s11  ;;  %p444_p9 = scmp.lt.u32.totalorder %s440_s11, %s587_s0 }
  0x16   :  { %p446_p10 = pnand %p444_p9, %p441_p8 }
  0x18   :  { %449 = shalt.err (!%p446_p10)
}
  0x19   :  { %s450_s16 = scalar_lea.vmem %s523_s21, 256  ;;  %p455_p12 = scmp.lt.s32.totalorder %s523_s21, %s523_s21 }
  0x1a   :  { %p451_p11 = scmp.ne.s32.totalorder %s523_s21, %s450_s16  ;;  %p456_p13 = scmp.lt.s32.totalorder %s450_s16, %s450_s16 }
  0x1c   :  { %p457_p0 = por %p456_p13, %p455_p12 }
  0x1e   :  { %p458_p1 = pnand %p457_p0, %p451_p11 }
  0x20   :  { %461 = shalt.err (!%p458_p1)
}
  0x21   :  { %23 = dma.hbm_to_vmem [thread:$0]  %s587_s0, 256, %s523_s21, [#allocation3], %s490_s30, %s490_s30, %s491_s6  }
  0x22   :  { %s492_s18 = smov [#allocation6]   ;;  %s462_s23 = scalar_lea.hbm %s590_s3, 2048 }
  0x23   :  { %s43_s19 = sshll.u32 %s492_s18, 4  ;;  %p463_p2 = scmp.ne.s32.totalorder %s590_s3, %s462_s23  ;;  %s44_s19 = int_to_ptr.vmem [resolvable:$true] %s43_s19 }
  0x24   :  { %p466_p3 = scmp.lt.u32.totalorder %s462_s23, %s590_s3 }
  0x26   :  { %p468_p4 = pnand %p466_p3, %p463_p2 }
  0x28   :  { %471 = shalt.err (!%p468_p4)
}
  0x29   :  { %s472_s28 = scalar_lea.vmem %s44_s19, 2048  ;;  %p477_p6 = scmp.lt.s32.totalorder %s44_s19, %s44_s19 }
  0x2a   :  { %p473_p5 = scmp.ne.s32.totalorder %s44_s19, %s472_s28  ;;  %p478_p7 = scmp.lt.s32.totalorder %s472_s28, %s472_s28 }
  0x2c   :  { %p479_p8 = por %p478_p7, %p477_p6 }
  0x2e   :  { %p480_p9 = pnand %p479_p8, %p473_p5 }
  0x30   :  { %483 = shalt.err (!%p480_p9)
}
  0x31   :  { %49 = dma.hbm_to_vmem [thread:$0]  %s590_s3, 2048, %s44_s19, [#allocation5], %s490_s30, %s490_s30, %s491_s6  }
  0x32   :  { %484 = dma.done.wait [#allocation3], 256  }
  0x33   :  { %485 = vsyncadd [#allocation3], 4294967040 }
  0x34   :  { %486 = dma.done.wait [#allocation5], 2304  }
  0x35   :  { %487 = vsyncadd [#allocation5], 4294964992  ;;  %vm72_vm0 = vcmask 130048   ;;  %v63_v0 = vld [vmem:[#allocation4] sm:$0xff]  ;;  %v64_v1 = vld [vmem:[#allocation4 + $0x8] sm:$0xff]  ;;  %vm282_vm1 = vcmask 31744  }
  0x36   :  { %v61_v2 = vld [vmem:[#allocation2] sm:$0xff]  ;;  %v361_v3 = vpack.c.bf16 %v64_v1, %v63_v0  ;;  %v167_v5 = vld [vmem:[#allocation6 + $0x8] sm:$0xff]  ;;  %v168_v8 = vld [vmem:[#allocation6 + $0x10] sm:$0xff] }
  0x37   :  { %323 = vmatprep.mubr.msk.f32.mxu0 %vm72_vm0, %v61_v2  ;;  %v166_v4 = vld [vmem:[#allocation6] sm:$0xff]  ;;  %v62_v7 = vld [vmem:[#allocation2 + $0x8] sm:$0xff]  ;;  %v169_v9 = vld [vmem:[#allocation6 + $0x18] sm:$0xff] }
  0x38   :  { %v365_v6 = vpack.c.bf16 %v167_v5, %v166_v4  ;;  %362 = vmatprep.subr.bf16.mxu0 %v361_v3  ;;  %v369_v10 = vpack.c.bf16 %v169_v9, %v168_v8  ;;  %v170_v11 = vld [vmem:[#allocation6 + $0x20] sm:$0xff]  ;;  %v171_v12 = vld [vmem:[#allocation6 + $0x28] sm:$0xff]  ;;  %v172_v14 = vld [vmem:[#allocation6 + $0x30] sm:$0xff] }
  0x39   :  { %364 = vmatpush3.bf16.msra.mxu0 %v361_v3  ;;  %v373_v13 = vpack.c.bf16 %v171_v12, %v170_v11  ;;  %v173_v15 = vld [vmem:[#allocation6 + $0x38] sm:$0xff]  ;;  %v174_v17 = vld [vmem:[#allocation6 + $0x40] sm:$0xff]  ;;  %v175_v18 = vld [vmem:[#allocation6 + $0x48] sm:$0xff] }
  0x3a   :  { %366 = vmatprep.subr.bf16.mxu1 %v365_v6  ;;  %v377_v16 = vpack.c.bf16 %v173_v15, %v172_v14  ;;  %v381_v19 = vpack.c.bf16 %v175_v18, %v174_v17  ;;  %v176_v20 = vld [vmem:[#allocation6 + $0x50] sm:$0xff]  ;;  %v177_v21 = vld [vmem:[#allocation6 + $0x58] sm:$0xff]  ;;  %v178_v23 = vld [vmem:[#allocation6 + $0x60] sm:$0xff] }
  0x3b   :  { %368 = vmatpush3.bf16.msra.mxu1 %v365_v6  ;;  %v385_v22 = vpack.c.bf16 %v177_v21, %v176_v20  ;;  %v179_v24 = vld [vmem:[#allocation6 + $0x68] sm:$0xff]  ;;  %v180_v25 = vld [vmem:[#allocation6 + $0x70] sm:$0xff]  ;;  %v181_v27 = vld [vmem:[#allocation6 + $0x78] sm:$0xff] }
  0x3c   :  { %324 = vmatmul.mubr.msk.f32.vlgmr.msra.gmra.mrb[0].mxu0 %vm72_vm0, %v62_v7  ;;  %370 = vmatprep.subr.bf16.mxu1 %v369_v10  ;;  %v389_v26 = vpack.c.bf16 %v179_v24, %v178_v23  ;;  %v393_v28 = vpack.c.bf16 %v181_v27, %v180_v25  ;;  %v291_v29 = vld [vmem:[%s589_s2] ss:$0 sm:$0xff] }
  0x3d   :  { %v296_v42 = vld [vmem:[%s591_s4] ss:$0 sm:$0xff] }
  0x3f   :  { %372 = vmatpush3.bf16.msra.mxu1 %v369_v10 }
  0x40   :  { %374 = vmatprep.subr.bf16.mxu1 %v373_v13 }
  0x43   :  { %376 = vmatpush3.bf16.msra.mxu1 %v373_v13 }
  0x44   :  { %378 = vmatprep.subr.bf16.mxu1 %v377_v16 }
  0x47   :  { %380 = vmatpush3.bf16.msra.mxu1 %v377_v16 }
  0x48   :  { %382 = vmatprep.subr.bf16.mxu1 %v381_v19 }
  0x4b   :  { %384 = vmatpush3.bf16.msra.mxu1 %v381_v19 }
  0x4c   :  { %386 = vmatprep.subr.bf16.mxu1 %v385_v22 }
  0x4f   :  { %388 = vmatpush3.bf16.msra.mxu1 %v385_v22 }
  0x50   :  { %390 = vmatprep.subr.bf16.mxu1 %v389_v26 }
  0x53   :  { %392 = vmatpush3.bf16.msra.mxu1 %v389_v26 }
  0x54   :  { %394 = vmatprep.subr.bf16.mxu1 %v393_v28 }
  0x57   :  { %396 = vmatpush3.bf16.msra.mxu1 %v393_v28 }
 0x10f   :  { %v325_v30 = vpop.f32.mrb[0].mxu0 }
 0x110   :  { %v151_v31 = vadd.f32 %v325_v30, %v291_v29  ;;  %v145_v32 = vpop.f32.mrb[1].mxu0 }
 0x111   :  { %v146_v33 = vadd.f32 %v291_v29, %v145_v32 }
 0x112   :  { %v295_v34 = vmul.f32 -1.442695, %v151_v31 }
 0x113   :  { %v294_v35 = vmul.f32 -1.442695, %v146_v33 }
 0x114   :  { %402 = vpow2.f32 %v295_v34 }
 0x115   :  { %404 = vpow2.f32 %v294_v35 }
 0x11e   :  { %v403_v36 = vpop.eup %402 }
 0x11f   :  { %v405_v37 = vpop.eup %404  ;;  %v161_v38 = vadd.f32 1.0, %v403_v36 }
 0x120   :  { %v160_v39 = vadd.f32 1.0, %v405_v37 }
 0x122   :  { %406 = vrcp.f32 %v160_v39 }
 0x123   :  { %408 = vrcp.f32 %v161_v38 }
 0x12c   :  { %v407_v40 = vpop.eup %406 }
 0x12d   :  { %v409_v41 = vpop.eup %408  ;;  %358 = vmatprep.mubr.f32.mxu1 %v407_v40 }
 0x12e   :  { %359 = vmatmul.mubr.f32.vlgmr.msra.gmra.mrb[0].mxu1 %v409_v41 }
 0x201   :  { %v360_v43 = vpop.f32.mrb[0].mxu1 }
 0x202   :  { %v255_v44 = vpop.f32.mrb[1].mxu1  ;;  %v261_v46 = vadd.f32 %v360_v43, %v296_v42 }
 0x203   :  { %v256_v45 = vadd.f32 %v296_v42, %v255_v44 }
 0x205   :  { %264 = vmax.xlane.f32.xlu0 %v256_v45 }
 0x209   :  { %266 = vmax.xlane.f32.xlu0 %v261_v46 }
 0x292   :  { %v265_v47 = vpop.xlane.xlu0 %264 }
 0x293   :  { %v268_v48 = vsub.f32 %v256_v45, %v265_v47 }
 0x295   :  { %v270_v49 = vmul.f32 1.442695, %v268_v48 }
 0x296   :  { %v267_v50 = vpop.xlane.xlu0 %266 }
 0x297   :  { %410 = vpow2.f32 %v270_v49  ;;  %v269_v51 = vsub.f32 %v261_v46, %v267_v50 }
 0x299   :  { %v272_v52 = vmul.f32 1.442695, %v269_v51 }
 0x29b   :  { %412 = vpow2.f32 %v272_v52 }
 0x2a1   :  { %v411_v53 = vpop.eup %410 }
 0x2a2   :  { %274 = vadd.xlane.f32.xlu1 %v411_v53 }
 0x2a5   :  { %v413_v54 = vpop.eup %412 }
 0x2a6   :  { %276 = vadd.xlane.f32.xlu1 %v413_v54 }
 0x32f   :  { %v275_v55 = vpop.xlane.xlu1 %274 }
 0x330   :  { %414 = vrcp.f32 %v275_v55 }
 0x333   :  { %v277_v56 = vpop.xlane.xlu1 %276 }
 0x334   :  { %416 = vrcp.f32 %v277_v56 }
 0x33a   :  { %v415_v57 = vpop.eup %414 }
 0x33b   :  { %v279_v58 = vmul.f32 %v415_v57, %v411_v53 }
 0x33d   :  { %283 = vst.msk [vmem:[%s592_s5] sm:$0xff] %vm282_vm1, %v279_v58 }
 0x33e   :  { %v417_v59 = vpop.eup %416 }
 0x33f   :  { %v281_v60 = vmul.f32 %v417_v59, %v413_v54 }
 0x341   :  { %284 = vst.msk [vmem:[%s592_s5 + $0x8] sm:$0xff] %vm282_vm1, %v281_v60 }
 0x342   :  { %289 = vsyncpa [#allocation3], 1 }
 0x343   :  { %290 = vsyncpa [#allocation5], 1 }

// kernel: tpu_custom_call.1
= control target key start
LH: loop header
LB: loop body
LE: loop exit
PB: predicated region body
PF: predicated region fallthrough
CT: control target
= control target key end

     0   :  { %10 = vsyncpa [#allocation3], 0  ;;  %s587_s0 = inlined_call_operand.hbm [shape: f32[10,16], index: 0, kind: input, shape index: {}]   ;;  %s588_s1 = inlined_call_operand.hbm [shape: f32[16,128], index: 1, kind: input, shape index: {}]   ;;  %s589_s2 = inlined_call_operand.vmem [shape: f32[1,128], index: 2, kind: input, shape index: {}]   ;;  %s590_s3 = inlined_call_operand.hbm [shape: f32[128,128], index: 3, kind: input, shape index: {}]   ;;  %s591_s4 = inlined_call_operand.vmem [shape: f32[1,128], index: 4, kind: input, shape index: {}]   ;;  %s592_s5 = inlined_call_operand.vmem [shape: f32[10,4], index: 5, kind: output, shape index: {}]  }
   0x1   :  { %11 = vsyncpa [#allocation5], 0  ;;  %s488_s18 = smov [#allocation4]   ;;  %s489_s20 = smov [#allocation2]  }
   0x2   :  { %s29_s19 = sshll.u32 %s488_s18, 4  ;;  %s17_s21 = sshll.u32 %s489_s20, 4  ;;  %s30_s19 = int_to_ptr.vmem [resolvable:$true] %s29_s19  ;;  %s523_s21 = int_to_ptr.vmem [resolvable:$true] %s17_s21 }
   0x3   :  { %s418_s24 = scalar_lea.hbm %s588_s1, 256 }
   0x4   :  { %p419_p0 = scmp.ne.s32.totalorder %s588_s1, %s418_s24  ;;  %p422_p1 = scmp.lt.u32.totalorder %s418_s24, %s588_s1 }
   0x6   :  { %p424_p2 = pnand %p422_p1, %p419_p0 }
   0x8   :  { %427 = shalt.err (!%p424_p2)
}
   0x9   :  { %s428_s29 = scalar_lea.vmem %s30_s19, 256  ;;  %p433_p4 = scmp.lt.s32.totalorder %s30_s19, %s30_s19 }
   0xa   :  { %p429_p3 = scmp.ne.s32.totalorder %s30_s19, %s428_s29  ;;  %p434_p5 = scmp.lt.s32.totalorder %s428_s29, %s428_s29 }
   0xc   :  { %p435_p6 = por %p434_p5, %p433_p4 }
   0xe   :  { %p436_p7 = pnand %p435_p6, %p429_p3 }
  0x10   :  { %439 = shalt.err (!%p436_p7)
}
  0x11   :  { %s490_s30 = smov 128   ;;  %s491_s6 = smov 8  }
  0x12   :  { %35 = dma.hbm_to_vmem [thread:$0]  %s588_s1, 256, %s30_s19, [#allocation5], %s490_s30, %s490_s30, %s491_s6  }
  0x13   :  { %s440_s11 = scalar_lea.hbm %s587_s0, 256 }
  0x14   :  { %p441_p8 = scmp.ne.s32.totalorder %s587_s0, %s440_s11  ;;  %p444_p9 = scmp.lt.u32.totalorder %s440_s11, %s587_s0 }
  0x16   :  { %p446_p10 = pnand %p444_p9, %p441_p8 }
  0x18   :  { %449 = shalt.err (!%p446_p10)
}
  0x19   :  { %s450_s16 = scalar_lea.vmem %s523_s21, 256  ;;  %p455_p12 = scmp.lt.s32.totalorder %s523_s21, %s523_s21 }
  0x1a   :  { %p451_p11 = scmp.ne.s32.totalorder %s523_s21, %s450_s16  ;;  %p456_p13 = scmp.lt.s32.totalorder %s450_s16, %s450_s16 }
  0x1c   :  { %p457_p0 = por %p456_p13, %p455_p12 }
  0x1e   :  { %p458_p1 = pnand %p457_p0, %p451_p11 }
  0x20   :  { %461 = shalt.err (!%p458_p1)
}
  0x21   :  { %23 = dma.hbm_to_vmem [thread:$0]  %s587_s0, 256, %s523_s21, [#allocation3], %s490_s30, %s490_s30, %s491_s6  }
  0x22   :  { %s492_s18 = smov [#allocation6]   ;;  %s462_s23 = scalar_lea.hbm %s590_s3, 2048 }
  0x23   :  { %s43_s19 = sshll.u32 %s492_s18, 4  ;;  %p463_p2 = scmp.ne.s32.totalorder %s590_s3, %s462_s23  ;;  %s44_s19 = int_to_ptr.vmem [resolvable:$true] %s43_s19 }
  0x24   :  { %p466_p3 = scmp.lt.u32.totalorder %s462_s23, %s590_s3 }
  0x26   :  { %p468_p4 = pnand %p466_p3, %p463_p2 }
  0x28   :  { %471 = shalt.err (!%p468_p4)
}
  0x29   :  { %s472_s28 = scalar_lea.vmem %s44_s19, 2048  ;;  %p477_p6 = scmp.lt.s32.totalorder %s44_s19, %s44_s19 }
  0x2a   :  { %p473_p5 = scmp.ne.s32.totalorder %s44_s19, %s472_s28  ;;  %p478_p7 = scmp.lt.s32.totalorder %s472_s28, %s472_s28 }
  0x2c   :  { %p479_p8 = por %p478_p7, %p477_p6 }
  0x2e   :  { %p480_p9 = pnand %p479_p8, %p473_p5 }
  0x30   :  { %483 = shalt.err (!%p480_p9)
}
  0x31   :  { %49 = dma.hbm_to_vmem [thread:$0]  %s590_s3, 2048, %s44_s19, [#allocation5], %s490_s30, %s490_s30, %s491_s6  }
  0x32   :  { %484 = dma.done.wait [#allocation3], 256  }
  0x33   :  { %485 = vsyncadd [#allocation3], 4294967040 }
  0x34   :  { %486 = dma.done.wait [#allocation5], 2304  }
  0x35   :  { %487 = vsyncadd [#allocation5], 4294964992  ;;  %vm72_vm0 = vcmask 130048   ;;  %v63_v0 = vld [vmem:[#allocation4] sm:$0xff]  ;;  %v64_v1 = vld [vmem:[#allocation4 + $0x8] sm:$0xff]  ;;  %vm282_vm1 = vcmask 31744  }
  0x36   :  { %v61_v2 = vld [vmem:[#allocation2] sm:$0xff]  ;;  %v361_v3 = vpack.c.bf16 %v64_v1, %v63_v0  ;;  %v167_v5 = vld [vmem:[#allocation6 + $0x8] sm:$0xff]  ;;  %v168_v8 = vld [vmem:[#allocation6 + $0x10] sm:$0xff] }
  0x37   :  { %323 = vmatprep.mubr.msk.f32.mxu0 %vm72_vm0, %v61_v2  ;;  %v166_v4 = vld [vmem:[#allocation6] sm:$0xff]  ;;  %v62_v7 = vld [vmem:[#allocation2 + $0x8] sm:$0xff]  ;;  %v169_v9 = vld [vmem:[#allocation6 + $0x18] sm:$0xff] }
  0x38   :  { %v365_v6 = vpack.c.bf16 %v167_v5, %v166_v4  ;;  %362 = vmatprep.subr.bf16.mxu0 %v361_v3  ;;  %v369_v10 = vpack.c.bf16 %v169_v9, %v168_v8  ;;  %v170_v11 = vld [vmem:[#allocation6 + $0x20] sm:$0xff]  ;;  %v171_v12 = vld [vmem:[#allocation6 + $0x28] sm:$0xff]  ;;  %v172_v14 = vld [vmem:[#allocation6 + $0x30] sm:$0xff] }
  0x39   :  { %364 = vmatpush3.bf16.msra.mxu0 %v361_v3  ;;  %v373_v13 = vpack.c.bf16 %v171_v12, %v170_v11  ;;  %v173_v15 = vld [vmem:[#allocation6 + $0x38] sm:$0xff]  ;;  %v174_v17 = vld [vmem:[#allocation6 + $0x40] sm:$0xff]  ;;  %v175_v18 = vld [vmem:[#allocation6 + $0x48] sm:$0xff] }
  0x3a   :  { %366 = vmatprep.subr.bf16.mxu1 %v365_v6  ;;  %v377_v16 = vpack.c.bf16 %v173_v15, %v172_v14  ;;  %v381_v19 = vpack.c.bf16 %v175_v18, %v174_v17  ;;  %v176_v20 = vld [vmem:[#allocation6 + $0x50] sm:$0xff]  ;;  %v177_v21 = vld [vmem:[#allocation6 + $0x58] sm:$0xff]  ;;  %v178_v23 = vld [vmem:[#allocation6 + $0x60] sm:$0xff] }
  0x3b   :  { %368 = vmatpush3.bf16.msra.mxu1 %v365_v6  ;;  %v385_v22 = vpack.c.bf16 %v177_v21, %v176_v20  ;;  %v179_v24 = vld [vmem:[#allocation6 + $0x68] sm:$0xff]  ;;  %v180_v25 = vld [vmem:[#allocation6 + $0x70] sm:$0xff]  ;;  %v181_v27 = vld [vmem:[#allocation6 + $0x78] sm:$0xff] }
  0x3c   :  { %324 = vmatmul.mubr.msk.f32.vlgmr.msra.gmra.mrb[0].mxu0 %vm72_vm0, %v62_v7  ;;  %370 = vmatprep.subr.bf16.mxu1 %v369_v10  ;;  %v389_v26 = vpack.c.bf16 %v179_v24, %v178_v23  ;;  %v393_v28 = vpack.c.bf16 %v181_v27, %v180_v25  ;;  %v291_v29 = vld [vmem:[%s589_s2] ss:$0 sm:$0xff] }
  0x3d   :  { %v296_v42 = vld [vmem:[%s591_s4] ss:$0 sm:$0xff] }
  0x3f   :  { %372 = vmatpush3.bf16.msra.mxu1 %v369_v10 }
  0x40   :  { %374 = vmatprep.subr.bf16.mxu1 %v373_v13 }
  0x43   :  { %376 = vmatpush3.bf16.msra.mxu1 %v373_v13 }
  0x44   :  { %378 = vmatprep.subr.bf16.mxu1 %v377_v16 }
  0x47   :  { %380 = vmatpush3.bf16.msra.mxu1 %v377_v16 }
  0x48   :  { %382 = vmatprep.subr.bf16.mxu1 %v381_v19 }
  0x4b   :  { %384 = vmatpush3.bf16.msra.mxu1 %v381_v19 }
  0x4c   :  { %386 = vmatprep.subr.bf16.mxu1 %v385_v22 }
  0x4f   :  { %388 = vmatpush3.bf16.msra.mxu1 %v385_v22 }
  0x50   :  { %390 = vmatprep.subr.bf16.mxu1 %v389_v26 }
  0x53   :  { %392 = vmatpush3.bf16.msra.mxu1 %v389_v26 }
  0x54   :  { %394 = vmatprep.subr.bf16.mxu1 %v393_v28 }
  0x57   :  { %396 = vmatpush3.bf16.msra.mxu1 %v393_v28 }
 0x10f   :  { %v325_v30 = vpop.f32.mrb[0].mxu0 }
 0x110   :  { %v151_v31 = vadd.f32 %v325_v30, %v291_v29  ;;  %v145_v32 = vpop.f32.mrb[1].mxu0 }
 0x111   :  { %v146_v33 = vadd.f32 %v291_v29, %v145_v32 }
 0x112   :  { %v295_v34 = vmul.f32 -1.442695, %v151_v31 }
 0x113   :  { %v294_v35 = vmul.f32 -1.442695, %v146_v33 }
 0x114   :  { %402 = vpow2.f32 %v295_v34 }
 0x115   :  { %404 = vpow2.f32 %v294_v35 }
 0x11e   :  { %v403_v36 = vpop.eup %402 }
 0x11f   :  { %v405_v37 = vpop.eup %404  ;;  %v161_v38 = vadd.f32 1.0, %v403_v36 }
 0x120   :  { %v160_v39 = vadd.f32 1.0, %v405_v37 }
 0x122   :  { %406 = vrcp.f32 %v160_v39 }
 0x123   :  { %408 = vrcp.f32 %v161_v38 }
 0x12c   :  { %v407_v40 = vpop.eup %406 }
 0x12d   :  { %v409_v41 = vpop.eup %408  ;;  %358 = vmatprep.mubr.f32.mxu1 %v407_v40 }
 0x12e   :  { %359 = vmatmul.mubr.f32.vlgmr.msra.gmra.mrb[0].mxu1 %v409_v41 }
 0x201   :  { %v360_v43 = vpop.f32.mrb[0].mxu1 }
 0x202   :  { %v255_v44 = vpop.f32.mrb[1].mxu1  ;;  %v261_v46 = vadd.f32 %v360_v43, %v296_v42 }
 0x203   :  { %v256_v45 = vadd.f32 %v296_v42, %v255_v44 }
 0x205   :  { %264 = vmax.xlane.f32.xlu0 %v256_v45 }
 0x209   :  { %266 = vmax.xlane.f32.xlu0 %v261_v46 }
 0x292   :  { %v265_v47 = vpop.xlane.xlu0 %264 }
 0x293   :  { %v268_v48 = vsub.f32 %v256_v45, %v265_v47 }
 0x295   :  { %v270_v49 = vmul.f32 1.442695, %v268_v48 }
 0x296   :  { %v267_v50 = vpop.xlane.xlu0 %266 }
 0x297   :  { %410 = vpow2.f32 %v270_v49  ;;  %v269_v51 = vsub.f32 %v261_v46, %v267_v50 }
 0x299   :  { %v272_v52 = vmul.f32 1.442695, %v269_v51 }
 0x29b   :  { %412 = vpow2.f32 %v272_v52 }
 0x2a1   :  { %v411_v53 = vpop.eup %410 }
 0x2a2   :  { %274 = vadd.xlane.f32.xlu1 %v411_v53 }
 0x2a5   :  { %v413_v54 = vpop.eup %412 }
 0x2a6   :  { %276 = vadd.xlane.f32.xlu1 %v413_v54 }
 0x32f   :  { %v275_v55 = vpop.xlane.xlu1 %274 }
 0x330   :  { %414 = vrcp.f32 %v275_v55 }
 0x333   :  { %v277_v56 = vpop.xlane.xlu1 %276 }
 0x334   :  { %416 = vrcp.f32 %v277_v56 }
 0x33a   :  { %v415_v57 = vpop.eup %414 }
 0x33b   :  { %v279_v58 = vmul.f32 %v415_v57, %v411_v53 }
 0x33d   :  { %283 = vst.msk [vmem:[%s592_s5] sm:$0xff] %vm282_vm1, %v279_v58 }
 0x33e   :  { %v417_v59 = vpop.eup %416 }
 0x33f   :  { %v281_v60 = vmul.f32 %v417_v59, %v413_v54 }
 0x341   :  { %284 = vst.msk [vmem:[%s592_s5 + $0x8] sm:$0xff] %vm282_vm1, %v281_v60 }
 0x342   :  { %289 = vsyncpa [#allocation3], 1 }
 0x343   :  { %290 = vsyncpa [#allocation5], 1 }

</bundles_post_ra>
